<compile_context>
chip_gen: v7x
topology: tpu7x:2x2x1
jax: 0.10.0
libtpu: 0.0.40
codegen_flags: <defaults>
</compile_context>

<pallas_src>
import jax
import jax.numpy as jnp
from jax import lax
from jax.experimental import pallas as pl
from jax.experimental.pallas import tpu as pltpu


def fancy_mlp_kernel(x_ref, w_ref, b_ref, out_ref, res_ref):
    x = x_ref[...]       # (N, D) f32
    wf = w_ref[0]        # (D, D) = W.T @ rand_weight      (folded at setup)
    wt = w_ref[1]        # (D, D) = W.T (pre-transposed at setup)
    bf = b_ref[0]        # (1, D) = b @ rand_weight + 1    (folded at setup)
    bb = b_ref[1]        # (1, D) = b

    # relu((x @ W.T + b) @ rw + 1) == relu(x @ (W.T @ rw) + (b @ rw + 1))
    h = jnp.maximum(jnp.dot(x, wf, preferred_element_type=jnp.float32) + bf, 0.0)
    # Second application of the shared Linear.
    h = jnp.dot(h, wt, preferred_element_type=jnp.float32) + bb

    # Reductions; keep everything as (1, 1) vreg values so the epilogue stays
    # on the proven VPU/EUP vector path.
    total = jnp.sum(h, keepdims=True)        # (1, 1)  sum(h)
    sumsq = jnp.sum(h * h, keepdims=True)    # (1, 1)  ||h||^2
    norm = jnp.sqrt(sumsq)                   # Frobenius norm == torch .norm()

    # while norm*s > 1: s /= 2   ==>   s = 2^-k, k = max(ceil(log2(norm)), 0)
    k = jnp.maximum(jnp.ceil(jnp.log2(norm)), 0.0)   # norm==0: log2 -> -inf -> k=0
    scale = jnp.exp2(-k)
    # One-step correction: robust to +-1 error from EUP log2/exp2 rounding at
    # power-of-2 boundaries (halving/doubling by 0.5/2.0 is fp-exact).
    scale = jnp.where(norm * scale > 1.0, scale * 0.5, scale)
    scale = jnp.where((k > 0.0) & (norm * scale * 2.0 <= 1.0), scale * 2.0, scale)
    # if (rescaled) norm < 0.8: h *= 10
    scale = jnp.where(norm * scale < 0.8, scale * 10.0, scale)

    # Stage the (1,1) vector result in VMEM scratch, then emit a single scalar
    # through the SMEM output (avoids the masked vst + padded-tile writeback).
    res_ref[...] = total * scale
    out_ref[0, 0] = res_ref[0, 0]


def make_fancy_mlp(w, b, rw):
    """One-time parameter setup; returns a jitted forward(x) -> scalar."""
    w = jnp.asarray(w, jnp.float32)                  # (D, D) torch Linear weight
    b = jnp.asarray(b, jnp.float32).reshape(1, -1)   # (1, D) torch Linear bias
    rw = jnp.asarray(rw, jnp.float32)                # (D, D) fixed rand_weight

    # Exact algebraic folding (associativity of matmul), done ONCE here rather
    # than per call, and packed into two arrays to minimize per-call DMAs.
    wt = w.T                                 # (in, out): no in-kernel transpose
    weights = jnp.stack([wt @ rw, wt])       # (2, D, D): [folded, plain]
    biases = jnp.stack([b @ rw + 1.0, b])    # (2, 1, D): [folded(+1), plain]

    @jax.jit
    def forward(x):
        out = pl.pallas_call(
            fancy_mlp_kernel,
            out_shape=jax.ShapeDtypeStruct((1, 1), jnp.float32),
            in_specs=[pl.BlockSpec(memory_space=pltpu.MemorySpace.VMEM)] * 3,
            out_specs=pl.BlockSpec(memory_space=pltpu.MemorySpace.SMEM),
            scratch_shapes=[pltpu.VMEM((1, 1), jnp.float32)],
        )(x, weights, biases)
        return out[0, 0]

    return forward


def reference(x, w, b, rw):
    # Pure-JAX reference of the exact torch semantics (for sanity check).
    h = x @ w.T + b
    h = jnp.maximum(h @ rw + 1.0, 0.0)
    h = h @ w.T + b
    n = jnp.linalg.norm(h)
    s = lax.while_loop(lambda s: n * s > 1.0, lambda s: s * 0.5, jnp.float32(1.0))
    s = jnp.where(n * s < 0.8, s * 10.0, s)
    return jnp.sum(h) * s


if __name__ == "__main__":
    key = jax.random.PRNGKey(0)
    kx, kw, kb, kr = jax.random.split(key, 4)

    N, D = 2, 20
    x = jax.random.normal(kx, (N, D), dtype=jnp.float32)
    # nn.Linear(20, 20): weight (20,20) ~ U(-1/sqrt(20), 1/sqrt(20)), bias same range
    bound = 1.0 / jnp.sqrt(jnp.float32(D))
    w = jax.random.uniform(kw, (D, D), jnp.float32, -bound, bound)
    b = jax.random.uniform(kb, (1, D), jnp.float32, -bound, bound)
    # torch.rand((20,20)) ~ U[0,1)
    rw = jax.random.uniform(kr, (D, D), jnp.float32, 0.0, 1.0)

    fancy_mlp = make_fancy_mlp(w, b, rw)
    out = jax.block_until_ready(fancy_mlp(x))
    ref = jax.block_until_ready(reference(x, w, b, rw))
    # Folded (x @ (W.T @ rw)) rounds differently from ((x @ W.T) @ rw); loose
    # tolerance covers typical (non-threshold-adversarial) inputs.
    assert jnp.allclose(out, ref, rtol=1e-4, atol=1e-4), (out, ref)
    print("KERNEL_OK")
</pallas_src>

<mosaic_0001>
module attributes {stable_mosaic.version = 11 : i64} {
  func.func @fancy_mlp_kernel(%arg0: memref<2x20xf32, #tpu.memory_space<vmem>>, %arg1: memref<2x20x20xf32, #tpu.memory_space<vmem>>, %arg2: memref<2x1x20xf32, #tpu.memory_space<vmem>>, %arg3: memref<1x1xf32, #tpu.memory_space<smem>>, %arg4: memref<1x1xf32, #tpu.memory_space<vmem>>) attributes {dimension_semantics = [], scalar_prefetch = 0 : i64, scratch_operands = 1 : i64, tpu.core_type = #tpu.core_type<tc>} {
    %c0 = arith.constant 0 : index
    %c0_0 = arith.constant 0 : index
    %0 = vector.load %arg0[%c0, %c0_0] : memref<2x20xf32, #tpu.memory_space<vmem>>, vector<2x20xf32>
    %c0_1 = arith.constant 0 : index
    %c0_2 = arith.constant 0 : index
    %c0_3 = arith.constant 0 : index
    %1 = vector.load %arg1[%c0_1, %c0_2, %c0_3] : memref<2x20x20xf32, #tpu.memory_space<vmem>>, vector<1x20x20xf32>
    %2 = vector.shape_cast %1 : vector<1x20x20xf32> to vector<20x20xf32>
    %c1 = arith.constant 1 : index
    %c0_4 = arith.constant 0 : index
    %c0_5 = arith.constant 0 : index
    %3 = vector.load %arg1[%c1, %c0_4, %c0_5] : memref<2x20x20xf32, #tpu.memory_space<vmem>>, vector<1x20x20xf32>
    %4 = vector.shape_cast %3 : vector<1x20x20xf32> to vector<20x20xf32>
    %c0_6 = arith.constant 0 : index
    %c0_7 = arith.constant 0 : index
    %c0_8 = arith.constant 0 : index
    %5 = vector.load %arg2[%c0_6, %c0_7, %c0_8] : memref<2x1x20xf32, #tpu.memory_space<vmem>>, vector<1x1x20xf32>
    %6 = vector.shape_cast %5 : vector<1x1x20xf32> to vector<1x20xf32>
    %c1_9 = arith.constant 1 : index
    %c0_10 = arith.constant 0 : index
    %c0_11 = arith.constant 0 : index
    %7 = vector.load %arg2[%c1_9, %c0_10, %c0_11] : memref<2x1x20xf32, #tpu.memory_space<vmem>>, vector<1x1x20xf32>
    %8 = vector.shape_cast %7 : vector<1x1x20xf32> to vector<1x20xf32>
    %cst = arith.constant dense<0.000000e+00> : vector<2x20xf32>
    %9 = tpu.matmul %0, %2, %cst {dimension_numbers = #tpu.dot_dimension_numbers<[1], [0], [0], [1], [0, 0, 1, 1], [], []>} : vector<2x20xf32>, vector<20x20xf32>, vector<2x20xf32> -> vector<2x20xf32>
    %10 = vector.broadcast %6 : vector<1x20xf32> to vector<2x20xf32>
    %11 = arith.addf %9, %10 : vector<2x20xf32>
    %cst_12 = arith.constant 0.000000e+00 : f32
    %12 = vector.broadcast %cst_12 : f32 to vector<2x20xf32>
    %13 = arith.maximumf %11, %12 : vector<2x20xf32>
    %cst_13 = arith.constant dense<0.000000e+00> : vector<2x20xf32>
    %14 = tpu.matmul %13, %4, %cst_13 {dimension_numbers = #tpu.dot_dimension_numbers<[1], [0], [0], [1], [0, 0, 1, 1], [], []>} : vector<2x20xf32>, vector<20x20xf32>, vector<2x20xf32> -> vector<2x20xf32>
    %15 = vector.broadcast %8 : vector<1x20xf32> to vector<2x20xf32>
    %16 = arith.addf %14, %15 : vector<2x20xf32>
    %17 = vector.shape_cast %16 : vector<2x20xf32> to vector<1x2x20xf32>
    %cst_14 = arith.constant dense<0.000000e+00> : vector<1xf32>
    %18 = vector.multi_reduction <add>, %17, %cst_14 [1, 2] : vector<1x2x20xf32> to vector<1xf32>
    %19 = vector.shape_cast %18 : vector<1xf32> to vector<1x1x1xf32>
    %20 = vector.extract %19[0, 0, 0] : f32 from vector<1x1x1xf32>
    %21 = vector.broadcast %20 : f32 to vector<1x1xf32>
    %22 = arith.mulf %16, %16 : vector<2x20xf32>
    %23 = vector.shape_cast %22 : vector<2x20xf32> to vector<1x2x20xf32>
    %cst_15 = arith.constant dense<0.000000e+00> : vector<1xf32>
    %24 = vector.multi_reduction <add>, %23, %cst_15 [1, 2] : vector<1x2x20xf32> to vector<1xf32>
    %25 = vector.shape_cast %24 : vector<1xf32> to vector<1x1x1xf32>
    %26 = vector.extract %25[0, 0, 0] : f32 from vector<1x1x1xf32>
    %27 = vector.broadcast %26 : f32 to vector<1x1xf32>
    %28 = math.sqrt %27 : vector<1x1xf32>
    %29 = math.log %28 : vector<1x1xf32>
    %cst_16 = arith.constant 2.000000e+00 : f32
    %30 = math.log %cst_16 : f32
    %31 = vector.broadcast %30 : f32 to vector<1x1xf32>
    %32 = arith.divf %29, %31 : vector<1x1xf32>
    %33 = math.ceil %32 : vector<1x1xf32>
    %cst_17 = arith.constant 0.000000e+00 : f32
    %34 = vector.broadcast %cst_17 : f32 to vector<1x1xf32>
    %35 = arith.maximumf %33, %34 : vector<1x1xf32>
    %cst_18 = arith.constant 0.000000e+00 : f32
    %36 = vector.broadcast %cst_18 : f32 to vector<1x1xf32>
    %37 = arith.subf %36, %35 : vector<1x1xf32>
    %38 = math.exp2 %37 : vector<1x1xf32>
    %39 = arith.mulf %28, %38 : vector<1x1xf32>
    %cst_19 = arith.constant 1.000000e+00 : f32
    %40 = vector.broadcast %cst_19 : f32 to vector<1x1xf32>
    %41 = arith.cmpf ogt, %39, %40 : vector<1x1xf32>
    %cst_20 = arith.constant 5.000000e-01 : f32
    %42 = vector.broadcast %cst_20 : f32 to vector<1x1xf32>
    %43 = arith.mulf %38, %42 : vector<1x1xf32>
    %44 = arith.select %41, %43, %38 : vector<1x1xi1>, vector<1x1xf32>
    %cst_21 = arith.constant 0.000000e+00 : f32
    %45 = vector.broadcast %cst_21 : f32 to vector<1x1xf32>
    %46 = arith.cmpf ogt, %35, %45 : vector<1x1xf32>
    %47 = arith.mulf %28, %44 : vector<1x1xf32>
    %cst_22 = arith.constant 2.000000e+00 : f32
    %48 = vector.broadcast %cst_22 : f32 to vector<1x1xf32>
    %49 = arith.mulf %47, %48 : vector<1x1xf32>
    %cst_23 = arith.constant 1.000000e+00 : f32
    %50 = vector.broadcast %cst_23 : f32 to vector<1x1xf32>
    %51 = arith.cmpf ole, %49, %50 : vector<1x1xf32>
    %52 = arith.andi %46, %51 : vector<1x1xi1>
    %cst_24 = arith.constant 2.000000e+00 : f32
    %53 = vector.broadcast %cst_24 : f32 to vector<1x1xf32>
    %54 = arith.mulf %44, %53 : vector<1x1xf32>
    %55 = arith.select %52, %54, %44 : vector<1x1xi1>, vector<1x1xf32>
    %56 = arith.mulf %28, %55 : vector<1x1xf32>
    %cst_25 = arith.constant 8.000000e-01 : f32
    %57 = vector.broadcast %cst_25 : f32 to vector<1x1xf32>
    %58 = arith.cmpf olt, %56, %57 : vector<1x1xf32>
    %cst_26 = arith.constant 1.000000e+01 : f32
    %59 = vector.broadcast %cst_26 : f32 to vector<1x1xf32>
    %60 = arith.mulf %55, %59 : vector<1x1xf32>
    %61 = arith.select %58, %60, %55 : vector<1x1xi1>, vector<1x1xf32>
    %62 = arith.mulf %21, %61 : vector<1x1xf32>
    %c0_27 = arith.constant 0 : index
    %c0_28 = arith.constant 0 : index
    %63 = vector.load %arg4[%c0_27, %c0_28] : memref<1x1xf32, #tpu.memory_space<vmem>>, vector<1x1xf32>
    tpu.vector_store %arg4[%c0_27, %c0_28], %62 {strides = array<i32>} : memref<1x1xf32, #tpu.memory_space<vmem>>, vector<1x1xf32>,
    %c0_29 = arith.constant 0 : index
    %c0_30 = arith.constant 0 : index
    %64 = vector.load %arg4[%c0_29, %c0_30] : memref<1x1xf32, #tpu.memory_space<vmem>>, vector<1x1xf32>
    %65 = vector.extract %64[0, 0] : f32 from vector<1x1xf32>
    %c0_31 = arith.constant 0 : index
    %c0_32 = arith.constant 0 : index
    %66 = memref.load %arg3[%c0_31, %c0_32] : memref<1x1xf32, #tpu.memory_space<smem>>
    memref.store %65, %arg3[%c0_31, %c0_32] : memref<1x1xf32, #tpu.memory_space<smem>>
    return
  }
}

</mosaic_0001>

<bundles_post_ra>
// kernel: forward.1
= control target key start
LH: loop header
LB: loop body
LE: loop exit
PB: predicated region body
PF: predicated region fallthrough
CT: control target
= control target key end

     0   :  { %8 = vsyncpa [#allocation4], 0  ;;  %s494_s0 = inlined_call_operand.hbm [shape: f32[2,20], index: 0, kind: input, shape index: {}]   ;;  %s495_s1 = inlined_call_operand.hbm [shape: f32[2,20,20], index: 1, kind: input, shape index: {}]   ;;  %s496_s2 = inlined_call_operand.vmem [shape: f32[2,1,20], index: 2, kind: input, shape index: {}]   ;;  %s497_s3 = inlined_call_operand.hbm [shape: f32[1,1], index: 3, kind: output, shape index: {}]  }
   0x1   :  { %9 = vsyncpa [#allocation7], 0 }
   0x2   :  { %10 = vsyncpa [#allocation5], 0  ;;  %s414_s12 = smov [#allocation3]   ;;  %s415_s14 = smov [#allocation6]  }
   0x3   :  { %s17_s13 = sshll.u32 %s414_s12, 4  ;;  %s26_s15 = sshll.u32 %s415_s14, 4  ;;  %s18_s13 = int_to_ptr.vmem [resolvable:$true] %s17_s13  ;;  %s442_s15 = int_to_ptr.vmem [resolvable:$true] %s26_s15 }
   0x4   :  { %s354_s18 = scalar_lea.hbm %s494_s0, 32 }
   0x5   :  { %p355_p0 = scmp.ne.s32.totalorder %s494_s0, %s354_s18  ;;  %p358_p1 = scmp.lt.u32.totalorder %s354_s18, %s494_s0 }
   0x7   :  { %p360_p2 = pnand %p358_p1, %p355_p0 }
   0x9   :  { %363 = shalt.err (!%p360_p2)
}
   0xa   :  { %s364_s23 = scalar_lea.vmem %s18_s13, 32  ;;  %p369_p4 = scmp.lt.s32.totalorder %s18_s13, %s18_s13 }
   0xb   :  { %p365_p3 = scmp.ne.s32.totalorder %s18_s13, %s364_s23  ;;  %p370_p5 = scmp.lt.s32.totalorder %s364_s23, %s364_s23 }
   0xd   :  { %p371_p6 = por %p370_p5, %p369_p4 }
   0xf   :  { %p372_p7 = pnand %p371_p6, %p365_p3 }
  0x11   :  { %375 = shalt.err (!%p372_p7)
}
  0x12   :  { %20 = dma.hbm_to_vmem [thread:$0]  %s494_s0, 32, %s18_s13, [#allocation4]  }
  0x13   :  { %s376_s28 = scalar_lea.hbm %s495_s1, 768 }
  0x14   :  { %p377_p8 = scmp.ne.s32.totalorder %s495_s1, %s376_s28  ;;  %p380_p9 = scmp.lt.u32.totalorder %s376_s28, %s495_s1 }
  0x16   :  { %p382_p10 = pnand %p380_p9, %p377_p8 }
  0x18   :  { %385 = shalt.err (!%p382_p10)
}
  0x19   :  { %s386_s6 = scalar_lea.vmem %s442_s15, 768  ;;  %p391_p12 = scmp.lt.s32.totalorder %s442_s15, %s442_s15 }
  0x1a   :  { %p387_p11 = scmp.ne.s32.totalorder %s442_s15, %s386_s6  ;;  %p392_p13 = scmp.lt.s32.totalorder %s386_s6, %s386_s6 }
  0x1c   :  { %p393_p0 = por %p392_p13, %p391_p12 }
  0x1e   :  { %p394_p1 = pnand %p393_p0, %p387_p11 }
  0x20   :  { %397 = shalt.err (!%p394_p1)
}
  0x21   :  { %s416_s0 = smov 128   ;;  %s417_s7 = smov 8  }
  0x22   :  { %32 = dma.hbm_to_vmem [thread:$0]  %s495_s1, 768, %s442_s15, [#allocation7], %s416_s0, %s416_s0, %s417_s7  }
  0x23   :  { %408 = dma.done.wait [#allocation4], 32  }
  0x24   :  { %409 = vsyncadd [#allocation4], 4294967264 }
  0x25   :  { %410 = dma.done.wait [#allocation7], 768  }
  0x26   :  { %411 = vsyncadd [#allocation7], 4294966528  ;;  %v418_v0 = vmov 0.0|0.0   ;;  %vm419_vm0 = vmmov 0   ;;  %v420_v1 = vmov 0.0   ;;  %v42_v2 = vld [vmem:[#allocation6] sm:$0xff] }
  0x27   :  { %328 = vmatprep.subr.bf16.mxu0 %v418_v0  ;;  %316 = vmatprep.mubr.msk.f32.mxu0 %vm419_vm0, %v420_v1  ;;  %v43_v3 = vld [vmem:[#allocation6 + $0x8] sm:$0xff]  ;;  %v44_v5 = vld [vmem:[#allocation6 + $0x10] sm:$0xf]  ;;  %vm62_vm1 = vcmask 1043456   ;;  %v41_v6 = vld [vmem:[#allocation3] sm:$0x3] }
  0x28   :  { %331 = vmatprep.subr.bf16.mxu1 %v418_v0  ;;  %325 = vmatprep.mubr.msk.f32.mxu1 %vm419_vm0, %v420_v1  ;;  %v329_v4 = vpack.c.bf16 %v43_v3, %v42_v2  ;;  %vm58_vm2 = vcmask 162816   ;;  %v46_v7 = vld [vmem:[#allocation6 + $0x18] sm:$0xff]  ;;  %v47_v8 = vld [vmem:[#allocation6 + $0x20] sm:$0xff]  ;;  %v48_v10 = vld [vmem:[#allocation6 + $0x28] sm:$0xf]  ;;  %vm219_vm3 = vcmask 156672  }
  0x29   :  { %v332_v9 = vpack.c.bf16 %v47_v8, %v46_v7  ;;  %v296_v11 = vld [vmem:[%s496_s2] ss:$0 sm:$0xff]  ;;  %v299_v16 = vld [vmem:[%s496_s2 + $0x1] ss:$0 sm:$0xff]  ;;  %vm274_vm11 = vcmask 0   ;;  %s398_s17 = scalar_lea.hbm %s497_s3, 16 }
  0x2a   :  { %330 = vmatpush3.bf16.msra.mxu0 %v329_v4  ;;  %p399_p2 = scmp.ne.s32.totalorder %s497_s3, %s398_s17  ;;  %p402_p3 = scmp.lt.u32.totalorder %s398_s17, %s497_s3 }
  0x2b   :  { %314 = vmatprep.subr.mxu0 %v420_v1  ;;  %333 = vmatpush3.bf16.msra.mxu1 %v332_v9 }
  0x2c   :  { %323 = vmatprep.subr.mxu1 %v420_v1  ;;  %p404_p4 = pnand %p402_p3, %p399_p2 }
  0x2e   :  { %315 = vmatpush3.msk.msra.mxu0 %vm62_vm1, %v44_v5 }
  0x2f   :  { %317 = vmatmul.mubr.msk.f32.vlgmr.msra.gmra.mrb[0].mxu0 %vm58_vm2, %v41_v6  ;;  %324 = vmatpush3.msk.msra.mxu1 %vm62_vm1, %v48_v10 }
 0x102   :  { %v132_v12 = vpop.f32.mrb[0].mxu0 }
 0x103   :  { %v133_v13 = vadd.f32 %v296_v11, %v132_v12  ;;  %v318_v14 = vpop.f32.mrb[1].mxu0 }
 0x105   :  { %v136_v15 = vmax.f32 %v133_v13, 0.0 }
 0x107   :  { %326 = vmatmul.mubr.msk.f32.vlgmr.msra.gmra.mrb[0].mxu1 %vm58_vm2, %v136_v15 }
 0x1da   :  { %v215_v17 = vpop.f32.mrb[0].mxu1 }
 0x1db   :  { %v216_v18 = vadd.f32 %v299_v16, %v215_v17  ;;  %v327_v19 = vpop.f32.mrb[1].mxu1 }
 0x1dd   :  { %v220_v20 = vsel %vm219_vm3, %v216_v18, 0.0  ;;  %v231_v21 = vmul.f32 %v216_v18, %v216_v18 }
 0x1de   :  { %221 = vadd.xlane.f32.xlu0 %v220_v20 }
 0x1df   :  { %v232_v22 = vsel %vm219_vm3, %v231_v21, 0.0 }
 0x1e2   :  { %233 = vadd.xlane.f32.xlu0 %v232_v22 }
 0x26b   :  { %v222_v23 = vpop.xlane.xlu0 %221 }
 0x26c   :  { %v223_v24 = vrot.slane %v222_v23, 4 }
 0x26e   :  { %v224_v25 = vadd.f32 %v223_v24, %v222_v23 }
 0x26f   :  { %v234_v26 = vpop.xlane.xlu0 %233 }
 0x270   :  { %v225_v27 = vrot.slane %v224_v25, 2  ;;  %v235_v28 = vrot.slane %v234_v26, 4 }
 0x272   :  { %v236_v29 = vadd.f32 %v235_v28, %v234_v26  ;;  %v226_v30 = vadd.f32 %v225_v27, %v224_v25 }
 0x274   :  { %v237_v31 = vrot.slane %v236_v29, 2  ;;  %v227_v32 = vrot.slane %v226_v30, 1 }
 0x276   :  { %v238_v33 = vadd.f32 %v237_v31, %v236_v29  ;;  %v228_v34 = vadd.f32 %v227_v32, %v226_v30 }
 0x278   :  { %334 = vpush %v228_v34  ;;  %v239_v35 = vrot.slane %v238_v33, 1 }
 0x27a   :  { %v240_v36 = vadd.f32 %v239_v35, %v238_v33 }
 0x27c   :  { %336 = vpush %v240_v36 }
 0x2a9   :  { %s479_s2 = spop %334 }
 0x2aa   :  { %v230_v59 = vstv %s479_s2 }
 0x2ad   :  { %s337_s13 = spop %336 }
 0x2ae   :  { %v242_v37 = vstv %s337_s13 }
 0x2af   :  { %348 = vrsqrt.f32 %v242_v37  ;;  %vm245_vm4 = vcmp.eq.f32.partialorder %v242_v37, inf  ;;  %v248_v40 = vand.u32 2147483648, %v242_v37  ;;  %vm247_vm5 = vcmp.eq.f32.partialorder %v242_v37, 0.0 }
 0x2b9   :  { %v349_v38 = vpop.eup %348 }
 0x2ba   :  { %v244_v39 = vmul.f32 %v349_v38, %v242_v37 }
 0x2bc   :  { %v246_v41 = vsel %vm245_vm4, %v242_v37, %v244_v39 }
 0x2bd   :  { %v249_v42 = vsel %vm247_vm5, %v248_v40, %v246_v41 }
 0x2be   :  { %350 = vlog2.f32 %v249_v42 }
 0x2c8   :  { %v351_v43 = vpop.eup %350 }
 0x2c9   :  { %v251_v44 = vmul.f32 0.6931472, %v351_v43 }
 0x2cb   :  { %v253_v45 = vmul.f32 1.442695, %v251_v44 }
 0x2cd   :  { %v254_v46 = vceil.f32 %v253_v45 }
 0x2cf   :  { %v255_v47 = vmax.f32 %v254_v46, 0.0 }
 0x2d1   :  { %v256_v48 = vsub.f32 0.0, %v255_v47  ;;  %vm262_vm7 = vcmp.gt.f32.partialorder %v255_v47, 0.0 }
 0x2d3   :  { %352 = vpow2.f32 %v256_v48 }
 0x2dd   :  { %v353_v49 = vpop.eup %352 }
 0x2de   :  { %v258_v50 = vmul.f32 %v353_v49, %v249_v42  ;;  %v260_v51 = vmul.f32 0.5, %v353_v49 }
 0x2e0   :  { %vm259_vm6 = vcmp.gt.f32.partialorder %v258_v50, 1.0 }
 0x2e1   :  { %v261_v52 = vsel %vm259_vm6, %v260_v51, %v353_v49 }
 0x2e2   :  { %v263_v53 = vmul.f32 %v261_v52, %v249_v42  ;;  %v267_v55 = vmul.f32 2.0, %v261_v52 }
 0x2e4   :  { %v264_v54 = vmul.f32 2.0, %v263_v53 }
 0x2e6   :  { %vm265_vm8 = vcmp.le.f32.partialorder %v264_v54, 1.0 }
 0x2e7   :  { %vm266_vm9 = vmand %vm262_vm7, %vm265_vm8 }
 0x2e8   :  { %v268_v56 = vsel %vm266_vm9, %v267_v55, %v261_v52 }
 0x2e9   :  { %v269_v57 = vmul.f32 %v268_v56, %v249_v42  ;;  %v271_v58 = vmul.f32 10.0, %v268_v56 }
 0x2eb   :  { %vm270_vm10 = vcmp.lt.f32.partialorder %v269_v57, 0.8 }
 0x2ec   :  { %v272_v60 = vsel %vm270_vm10, %v271_v58, %v268_v56 }
 0x2ed   :  { %v273_v61 = vmul.f32 %v272_v60, %v230_v59 }
 0x2ef   :  { %275 = vst.msk [vmem:[#allocation2] sm:$0x1] %vm274_vm11, %v273_v61 }
 0x2f6   :  { %v276_v62 = vld [vmem:[#allocation2] sm:$0x1] }
 0x2f7   :  { %338 = vpush %v276_v62 }
 0x328   :  { %s339_s14 = spop %338 }
 0x329   :  { %279 = sst [smem:[#allocation8]] %s339_s14 }
 0x32a   :  { %407 = shalt.err (!%p404_p4)
}
 0x32b   :  { %s421_s22 = smov [#allocation8]  }
 0x32c   :  { %287 = dma.smem_to_hbm %s421_s22, 16, %s497_s3, [#allocation5]  }
 0x32d   :  { %412 = dma.done.wait [#allocation5], 16  }
 0x32e   :  { %413 = vsyncadd [#allocation5], 4294967280 }
 0x32f   :  { %291 = sfence }
 0x330   :  { %292 = vsyncpa [#allocation4], 1 }
 0x331   :  { %293 = vsyncpa [#allocation7], 1 }
 0x332   :  { %294 = vsyncpa [#allocation5], 1 }

</bundles_post_ra>
